<compile_context>
chip_gen: v6e
topology: v6e:2x2x1
jax: 0.10.0
libtpu: 0.0.40
codegen_flags: <defaults>
</compile_context>

<pallas_src>
import functools

import jax
import jax.numpy as jnp
from jax.experimental import pallas as pl
from jax.experimental.pallas import tpu as pltpu


# ---------------------------------------------------------------------------
# Helpers
# ---------------------------------------------------------------------------

def _round_up(v, m):
    return ((v + m - 1) // m) * m


def _round_down(v, m):
    return (v // m) * m


def _sublane_granule(itemsize):
    # f32 -> 8, bf16 -> 16, int8/fp8 -> 32 (native sublane tiling).
    return max(8, 32 // itemsize)


def _reference(x, y):
    lx = jax.nn.log_softmax(x.astype(jnp.float32), axis=1)
    ly = jax.nn.log_softmax(y.astype(jnp.float32), axis=1)
    return 0.5 * jnp.mean(jnp.min(-lx - ly, axis=1))


# ---------------------------------------------------------------------------
# Kernels
# ---------------------------------------------------------------------------

def _mec_cols_kernel(xt_ref, yt_ref, o_ref, *, n_cols, block_cols):
    """Lane-dense path (C < 128): blocks are (C, block_cols), batch on lanes."""
    tile = pl.program_id(0)
    last = pl.num_programs(0) - 1

    x = xt_ref[...].astype(jnp.float32)            # (C, block_cols)
    y = yt_ref[...].astype(jnp.float32)

    # Max-stabilized logsumexp over the class (sublane) axis.
    xm = jnp.max(x, axis=0, keepdims=True)         # (1, block_cols)  lane-dense
    lse_x = xm + jnp.log(jnp.sum(jnp.exp(x - xm), axis=0, keepdims=True))
    ym = jnp.max(y, axis=0, keepdims=True)
    lse_y = ym + jnp.log(jnp.sum(jnp.exp(y - ym), axis=0, keepdims=True))

    # min_k(-lx - ly) = lse(x) + lse(y) - max_k(x + y)      -> (1, block_cols)
    per_col = lse_x + lse_y - jnp.max(x + y, axis=0, keepdims=True)

    @pl.when(tile != last)
    def _():                                        # full tile: no mask needed
        o_ref[0, 0] = jnp.sum(per_col)

    @pl.when(tile == last)
    def _():                                        # ragged tile: mask overhang
        col_ids = tile * block_cols + jax.lax.broadcasted_iota(
            jnp.int32, per_col.shape, 1)
        o_ref[0, 0] = jnp.sum(jnp.where(col_ids < n_cols, per_col, 0.0))


def _mec_rows_kernel(x_ref, y_ref, o_ref, *, n_rows, block_rows):
    """Row-tiled path (C >= 128): blocks are (block_rows, C), classes on lanes."""
    tile = pl.program_id(0)
    last = pl.num_programs(0) - 1

    x = x_ref[...].astype(jnp.float32)             # (block_rows, C)
    y = y_ref[...].astype(jnp.float32)

    xm = jnp.max(x, axis=-1, keepdims=True)        # (block_rows, 1)
    lse_x = xm + jnp.log(jnp.sum(jnp.exp(x - xm), axis=-1, keepdims=True))
    ym = jnp.max(y, axis=-1, keepdims=True)
    lse_y = ym + jnp.log(jnp.sum(jnp.exp(y - ym), axis=-1, keepdims=True))
    # TODO(synk): if a bundle profile shows the XLU saturating for very large C,
    # offload the two sum-exp lane reductions to the MXU (dot with a ones vector).
    per_row = lse_x + lse_y - jnp.max(x + y, axis=-1, keepdims=True)

    @pl.when(tile != last)
    def _():
        o_ref[0, 0] = jnp.sum(per_row)

    @pl.when(tile == last)
    def _():
        row_ids = tile * block_rows + jax.lax.broadcasted_iota(
            jnp.int32, per_row.shape, 0)
        o_ref[0, 0] = jnp.sum(jnp.where(row_ids < n_rows, per_row, 0.0))


# ---------------------------------------------------------------------------
# Block sizing (byte-based, generation-aware)
# ---------------------------------------------------------------------------

_F32 = 4
_TEMPS = 5  # live f32 temporaries per block: x/y upcasts, x+y, exp terms (upper bound)


def _vmem_budgets():
    """Generation-aware budgets: {block_budget, vmem_limit, min_tiles}."""
    vmem_phys = None
    try:
        vmem_phys = int(getattr(pltpu.get_tpu_info(), "vmem_capacity_bytes"))
    except Exception:
        vmem_phys = None
    if vmem_phys is not None and vmem_phys > (64 << 20):
        # v5e / v6e: 128 MiB VMEM, single TensorCore -> large tiles.
        return {"block_budget": 48 << 20, "vmem_limit": 96 << 20, "min_tiles": 1}
    # v7x-class (64 MiB VMEM, 2 TensorCores) or unknown -> conservative budget
    # and at least 2 tiles so the "parallel" axis can shard across both cores.
    return {"block_budget": 16 << 20, "vmem_limit": 40 << 20, "min_tiles": 2}


def _bytes_per_minor(c_padded, in_itemsize):
    # 2 inputs x 2 pipeline buffers (input dtype) + f32 compute temporaries.
    return c_padded * (4 * in_itemsize + _TEMPS * _F32)


def _choose_block_cols(n, c, in_itemsize, budgets):
    c_pad = _round_up(c, 8)                         # sublane padding in VMEM
    cols = budgets["block_budget"] // _bytes_per_minor(c_pad, in_itemsize)
    cols = max(128, min(cols, 32768))
    if budgets["min_tiles"] > 1 and n >= 2 * 128:
        half = _round_down(_round_up(n, 128) // budgets["min_tiles"], 128)
        cols = min(cols, max(128, half))
    cols = _round_down(cols, 128)
    if cols >= n:
        return n                                    # one full-extent block
    return cols


def _choose_block_rows(n, c, in_itemsize, budgets):
    c_pad = _round_up(c, 128)                       # lane padding in VMEM
    granule = _sublane_granule(in_itemsize)
    rows = budgets["block_budget"] // _bytes_per_minor(c_pad, in_itemsize)
    if rows < granule:
        return None                                 # C too large for one block
    rows = min(rows, 32768)
    if budgets["min_tiles"] > 1 and n >= 2 * granule:
        half = _round_down(_round_up(n, granule) // budgets["min_tiles"], granule)
        rows = min(rows, max(granule, half))
    rows = max(granule, _round_down(rows, granule))
    if rows >= n:
        return n
    return rows


# ---------------------------------------------------------------------------
# Public wrapper
# ---------------------------------------------------------------------------

def min_entropy_consensus_loss(x, y, *, block=None, fallback_below_elements=32768):
    """x, y: (N, C) logits (f32 or bf16). Returns scalar float32 loss."""
    assert x.shape == y.shape and x.ndim == 2
    n, c = x.shape

    # Tiny problems: pallas_call launch overhead dominates -> fused XLA path.
    if n * c < fallback_below_elements:
        return _reference(x, y)

    budgets = _vmem_budgets()
    itemsize = jnp.dtype(x.dtype).itemsize

    if c < 128:
        # Lane-dense path: batch on lanes, classes on sublanes.
        # TODO(synk): an in-kernel XLU transpose would avoid this extra HBM
        # pass; kept in the wrapper for lowering robustness.
        if block is not None:
            block_cols = n if block >= n else max(128, _round_down(block, 128))
        else:
            block_cols = _choose_block_cols(n, c, itemsize, budgets)
        num_tiles = pl.cdiv(n, block_cols)
        kernel = functools.partial(_mec_cols_kernel, n_cols=n, block_cols=block_cols)
        in_spec = pl.BlockSpec((c, block_cols), lambda i: (0, i))
        operands = (x.T, y.T)                        # (C, N)
    else:
        if block is not None:
            g = _sublane_granule(itemsize)
            block_rows = n if block >= n else max(g, _round_down(block, g))
        else:
            block_rows = _choose_block_rows(n, c, itemsize, budgets)
        if block_rows is None:
            return _reference(x, y)
        num_tiles = pl.cdiv(n, block_rows)
        kernel = functools.partial(_mec_rows_kernel, n_rows=n, block_rows=block_rows)
        in_spec = pl.BlockSpec((block_rows, c), lambda i: (i, 0))
        operands = (x, y)

    partials = pl.pallas_call(
        kernel,
        out_shape=jax.ShapeDtypeStruct((num_tiles, 1), jnp.float32),
        grid=(num_tiles,),
        in_specs=[in_spec, in_spec],
        out_specs=pl.BlockSpec((1, 1), lambda i: (i, 0),
                               memory_space=pltpu.MemorySpace.SMEM),
        compiler_params=pltpu.CompilerParams(
            dimension_semantics=("parallel",),
            vmem_limit_bytes=budgets["vmem_limit"],
        ),
    )(*operands)

    # Mean over the TRUE batch size (overhang rows/cols were masked in-kernel).
    return 0.5 * jnp.sum(partials) / n


if __name__ == "__main__":
    # Case 1: module-sized tiny problem (single full-extent tile, lane-dense path).
    kx, ky = jax.random.split(jax.random.PRNGKey(0))
    x1 = jax.random.normal(kx, (8, 16), dtype=jnp.float32)
    y1 = jax.random.normal(ky, (8, 16), dtype=jnp.float32)
    loss1 = jax.block_until_ready(
        min_entropy_consensus_loss(x1, y1, fallback_below_elements=0))
    ref1 = jax.block_until_ready(_reference(x1, y1))
    assert jnp.allclose(loss1, ref1, atol=1e-5, rtol=1e-5), (loss1, ref1)

    # Case 2: multi-tile lane-dense path with a ragged (masked) last tile.
    kx2, ky2 = jax.random.split(jax.random.PRNGKey(1))
    x2 = jax.random.normal(kx2, (300, 32), dtype=jnp.float32)
    y2 = jax.random.normal(ky2, (300, 32), dtype=jnp.float32)
    loss2 = jax.block_until_ready(
        min_entropy_consensus_loss(x2, y2, block=128, fallback_below_elements=0))
    ref2 = jax.block_until_ready(_reference(x2, y2))
    assert jnp.allclose(loss2, ref2, atol=1e-5, rtol=1e-5), (loss2, ref2)

    # Case 3: row-tiled path (C >= 128), bf16 inputs, ragged last tile.
    kx3, ky3 = jax.random.split(jax.random.PRNGKey(2))
    x3 = jax.random.normal(kx3, (100, 128), dtype=jnp.bfloat16)
    y3 = jax.random.normal(ky3, (100, 128), dtype=jnp.bfloat16)
    loss3 = jax.block_until_ready(
        min_entropy_consensus_loss(x3, y3, block=32, fallback_below_elements=0))
    ref3 = jax.block_until_ready(_reference(x3, y3))
    assert jnp.allclose(loss3, ref3, atol=2e-3, rtol=2e-3), (loss3, ref3)

    print("KERNEL_OK")
</pallas_src>

<mosaic_0001>
module attributes {stable_mosaic.version = 11 : i64} {
  func.func @_mec_cols_kernel(%arg0: i32, %arg1: memref<16x8xf32, #tpu.memory_space<vmem>>, %arg2: memref<16x8xf32, #tpu.memory_space<vmem>>, %arg3: memref<1x1xf32, #tpu.memory_space<smem>>) attributes {dimension_semantics = [#tpu.dimension_semantics<parallel>], iteration_bounds = array<i64: 1>, scalar_prefetch = 0 : i64, scratch_operands = 0 : i64, tpu.core_type = #tpu.core_type<tc>, window_params = [{transform_indices = @transform_0, window_bounds = array<i64: 16, 8>}, {transform_indices = @transform_1, window_bounds = array<i64: 16, 8>}, {transform_indices = @transform_2, window_bounds = array<i64: 1, 1>}]} {
    %c0 = arith.constant 0 : index
    %c0_0 = arith.constant 0 : index
    %0 = vector.load %arg1[%c0, %c0_0] : memref<16x8xf32, #tpu.memory_space<vmem>>, vector<16x8xf32>
    %c0_1 = arith.constant 0 : index
    %c0_2 = arith.constant 0 : index
    %1 = vector.load %arg2[%c0_1, %c0_2] : memref<16x8xf32, #tpu.memory_space<vmem>>, vector<16x8xf32>
    %cst = arith.constant dense<0xFF800000> : vector<8xf32>
    %2 = vector.multi_reduction <maximumf>, %0, %cst [0] : vector<16x8xf32> to vector<8xf32>
    %3 = vector.shape_cast %2 : vector<8xf32> to vector<1x8xf32>
    %4 = vector.broadcast %3 : vector<1x8xf32> to vector<16x8xf32>
    %5 = arith.subf %0, %4 : vector<16x8xf32>
    %6 = math.exp %5 : vector<16x8xf32>
    %cst_3 = arith.constant dense<0.000000e+00> : vector<8xf32>
    %7 = vector.multi_reduction <add>, %6, %cst_3 [0] : vector<16x8xf32> to vector<8xf32>
    %8 = vector.shape_cast %7 : vector<8xf32> to vector<1x8xf32>
    %9 = math.log %8 : vector<1x8xf32>
    %10 = arith.addf %3, %9 : vector<1x8xf32>
    %cst_4 = arith.constant dense<0xFF800000> : vector<8xf32>
    %11 = vector.multi_reduction <maximumf>, %1, %cst_4 [0] : vector<16x8xf32> to vector<8xf32>
    %12 = vector.shape_cast %11 : vector<8xf32> to vector<1x8xf32>
    %13 = vector.broadcast %12 : vector<1x8xf32> to vector<16x8xf32>
    %14 = arith.subf %1, %13 : vector<16x8xf32>
    %15 = math.exp %14 : vector<16x8xf32>
    %cst_5 = arith.constant dense<0.000000e+00> : vector<8xf32>
    %16 = vector.multi_reduction <add>, %15, %cst_5 [0] : vector<16x8xf32> to vector<8xf32>
    %17 = vector.shape_cast %16 : vector<8xf32> to vector<1x8xf32>
    %18 = math.log %17 : vector<1x8xf32>
    %19 = arith.addf %12, %18 : vector<1x8xf32>
    %20 = arith.addf %10, %19 : vector<1x8xf32>
    %21 = arith.addf %0, %1 : vector<16x8xf32>
    %cst_6 = arith.constant dense<0xFF800000> : vector<8xf32>
    %22 = vector.multi_reduction <maximumf>, %21, %cst_6 [0] : vector<16x8xf32> to vector<8xf32>
    %23 = vector.shape_cast %22 : vector<8xf32> to vector<1x8xf32>
    %24 = arith.subf %20, %23 : vector<1x8xf32>
    %c0_i32 = arith.constant 0 : i32
    %25 = arith.cmpi ne, %arg0, %c0_i32 : i32
    %26 = arith.extui %25 : i1 to i32
    %c0_i32_7 = arith.constant 0 : i32
    %27 = arith.cmpi ne, %26, %c0_i32_7 : i32
    scf.if %27 {
      %31 = vector.shape_cast %24 : vector<1x8xf32> to vector<1x1x8xf32>
      %cst_10 = arith.constant dense<0.000000e+00> : vector<1xf32>
      %32 = vector.multi_reduction <add>, %31, %cst_10 [1, 2] : vector<1x1x8xf32> to vector<1xf32>
      %33 = vector.shape_cast %32 : vector<1xf32> to vector<1x1x1xf32>
      %34 = vector.extract %33[0, 0, 0] : f32 from vector<1x1x1xf32>
      %c0_11 = arith.constant 0 : index
      %c0_12 = arith.constant 0 : index
      %35 = memref.load %arg3[%c0_11, %c0_12] : memref<1x1xf32, #tpu.memory_space<smem>>
      memref.store %34, %arg3[%c0_11, %c0_12] : memref<1x1xf32, #tpu.memory_space<smem>>
    } else {
    }
    %c0_i32_8 = arith.constant 0 : i32
    %28 = arith.cmpi eq, %arg0, %c0_i32_8 : i32
    %29 = arith.extui %28 : i1 to i32
    %c0_i32_9 = arith.constant 0 : i32
    %30 = arith.cmpi ne, %29, %c0_i32_9 : i32
    scf.if %30 {
      %c8_i32 = arith.constant 8 : i32
      %31 = arith.muli %arg0, %c8_i32 : i32
      %32 = tpu.iota {dimensions = array<i32: 1>} : vector<1x8xi32>
      %33 = vector.broadcast %31 : i32 to vector<1x8xi32>
      %34 = arith.addi %33, %32 : vector<1x8xi32>
      %c8_i32_10 = arith.constant 8 : i32
      %35 = vector.broadcast %c8_i32_10 : i32 to vector<1x8xi32>
      %36 = arith.cmpi slt, %34, %35 : vector<1x8xi32>
      %cst_11 = arith.constant 0.000000e+00 : f32
      %37 = vector.broadcast %cst_11 : f32 to vector<1x8xf32>
      %38 = arith.select %36, %24, %37 : vector<1x8xi1>, vector<1x8xf32>
      %39 = vector.shape_cast %38 : vector<1x8xf32> to vector<1x1x8xf32>
      %cst_12 = arith.constant dense<0.000000e+00> : vector<1xf32>
      %40 = vector.multi_reduction <add>, %39, %cst_12 [1, 2] : vector<1x1x8xf32> to vector<1xf32>
      %41 = vector.shape_cast %40 : vector<1xf32> to vector<1x1x1xf32>
      %42 = vector.extract %41[0, 0, 0] : f32 from vector<1x1x1xf32>
      %c0_13 = arith.constant 0 : index
      %c0_14 = arith.constant 0 : index
      %43 = memref.load %arg3[%c0_13, %c0_14] : memref<1x1xf32, #tpu.memory_space<smem>>
      memref.store %42, %arg3[%c0_13, %c0_14] : memref<1x1xf32, #tpu.memory_space<smem>>
    } else {
    }
    return
  }
  func.func @transform_0(%arg0: i32) -> (i32, i32) {
    %c0_i32 = arith.constant 0 : i32
    %c0_i32_0 = arith.constant 0 : i32
    return %c0_i32, %arg0 : i32, i32
  }
  func.func @transform_1(%arg0: i32) -> (i32, i32) {
    %c0_i32 = arith.constant 0 : i32
    %c0_i32_0 = arith.constant 0 : i32
    return %c0_i32, %arg0 : i32, i32
  }
  func.func @transform_2(%arg0: i32) -> (i32, i32) {
    %c0_i32 = arith.constant 0 : i32
    %c0_i32_0 = arith.constant 0 : i32
    return %arg0, %c0_i32 : i32, i32
  }
}

</mosaic_0001>

<bundles_post_ra>
// kernel: tpu_custom_call.1
= control target key start
LH: loop header
LB: loop body
LE: loop exit
PB: predicated region body
PF: predicated region fallthrough
CT: control target
= control target key end

     0   :  { %vm16_vm0 = vcmask 64512   ;;  %s204_s0 = inlined_call_operand.vmem [shape: f32[16,8], index: 0, kind: input, shape index: {}]   ;;  %s205_s1 = inlined_call_operand.vmem [shape: f32[16,8], index: 1, kind: input, shape index: {}]   ;;  %s206_s2 = inlined_call_operand.hbm [shape: f32[1,1], index: 2, kind: output, shape index: {}]  }
   0x1   :  { %v12_v0 = vld [vmem:[%s204_s0] sm:$0xff]  ;;  %v13_v1 = vld [vmem:[%s204_s0 + $0x8] sm:$0xff] }
   0x2   :  { %v14_v2 = vld [vmem:[%s205_s1] sm:$0xff]  ;;  %v15_v3 = vld [vmem:[%s205_s1 + $0x8] sm:$0xff]  ;;  %v17_v4 = vsel %vm16_vm0, %v12_v0, -inf  ;;  %v18_v5 = vsel %vm16_vm0, %v13_v1, -inf }
   0x3   :  { %v44_v6 = vsel %vm16_vm0, %v14_v2, -inf }
   0x4   :  { %7 = vsyncpa [#allocation3], 0  ;;  %v19_v7 = vmax.f32 %v17_v4, %v18_v5  ;;  %v45_v8 = vsel %vm16_vm0, %v15_v3, -inf  ;;  %v72_v39 = vadd.f32 %v14_v2, %v12_v0  ;;  %v73_v40 = vadd.f32 %v15_v3, %v13_v1  ;;  %s163_s1 = smov [#allocation2]  }
   0x5   :  { %v46_v9 = vmax.f32 %v44_v6, %v45_v8  ;;  %v106_v62 = vlaneseq  ;;  %vm112_vm2 = vcmask 57344  }
   0x6   :  { %v20_v10 = vrot.slane %v19_v7, 4  ;;  %v74_v45 = vsel %vm16_vm0, %v72_v39, -inf  ;;  %v75_v46 = vsel %vm16_vm0, %v73_v40, -inf }
   0x7   :  { %v47_v11 = vrot.slane %v46_v9, 4  ;;  %v76_v51 = vmax.f32 %v74_v45, %v75_v46  ;;  %v107_v4 = vand.u32 127, %v106_v62 }
   0x8   :  { %v21_v12 = vmax.f32 %v19_v7, %v20_v10 }
   0x9   :  { %v48_v13 = vmax.f32 %v46_v9, %v47_v11  ;;  %v77_v56 = vrot.slane %v76_v51, 4  ;;  %vm110_vm1 = vcmp.lt.s32.totalorder %v107_v4, 8 }
   0xa   :  { %v22_v14 = vrot.slane %v21_v12, 2 }
   0xb   :  { %v49_v15 = vrot.slane %v48_v13, 2  ;;  %v78_v58 = vmax.f32 %v76_v51, %v77_v56 }
   0xc   :  { %v23_v16 = vmax.f32 %v21_v12, %v22_v14 }
   0xd   :  { %v50_v17 = vmax.f32 %v48_v13, %v49_v15  ;;  %v79_v59 = vrot.slane %v78_v58, 2 }
   0xe   :  { %v24_v18 = vrot.slane %v23_v16, 1 }
   0xf   :  { %v51_v19 = vrot.slane %v50_v17, 1  ;;  %v80_v60 = vmax.f32 %v78_v58, %v79_v59 }
  0x10   :  { %v25_v20 = vmax.f32 %v23_v16, %v24_v18 }
  0x11   :  { %v52_v21 = vmax.f32 %v50_v17, %v51_v19 }
  0x12   :  { %v26_v22 = vsub.f32 %v12_v0, %v25_v20  ;;  %v27_v23 = vsub.f32 %v13_v1, %v25_v20  ;;  %v81_v0 = vrot.slane %v80_v60, 1 }
  0x13   :  { %v53_v24 = vsub.f32 %v14_v2, %v52_v21  ;;  %v54_v25 = vsub.f32 %v15_v3, %v52_v21 }
  0x14   :  { %v28_v26 = vmul.f32 1.442695, %v26_v22  ;;  %v30_v27 = vmul.f32 1.442695, %v27_v23  ;;  %v82_v6 = vmax.f32 %v80_v60, %v81_v0 }
  0x15   :  { %v55_v28 = vmul.f32 1.442695, %v53_v24  ;;  %v57_v29 = vmul.f32 1.442695, %v54_v25 }
  0x16   :  { %141 = vpow2.f32 %v28_v26 }
  0x17   :  { %143 = vpow2.f32 %v30_v27 }
  0x18   :  { %145 = vpow2.f32 %v55_v28 }
  0x19   :  { %147 = vpow2.f32 %v57_v29 }
  0x23   :  { %v142_v30 = vpop.eup %141 }
  0x24   :  { %v144_v31 = vpop.eup %143  ;;  %v32_v32 = vsel %vm16_vm0, %v142_v30, 0.0 }
  0x25   :  { %v146_v33 = vpop.eup %145  ;;  %v33_v34 = vsel %vm16_vm0, %v144_v31, 0.0 }
  0x26   :  { %v148_v35 = vpop.eup %147  ;;  %v34_v36 = vadd.f32 %v33_v34, %v32_v32  ;;  %v59_v37 = vsel %vm16_vm0, %v146_v33, 0.0 }
  0x27   :  { %v60_v38 = vsel %vm16_vm0, %v148_v35, 0.0 }
  0x28   :  { %v35_v41 = vrot.slane %v34_v36, 4  ;;  %v61_v42 = vadd.f32 %v60_v38, %v59_v37 }
  0x2a   :  { %v36_v43 = vadd.f32 %v35_v41, %v34_v36  ;;  %v62_v44 = vrot.slane %v61_v42, 4 }
  0x2c   :  { %v37_v47 = vrot.slane %v36_v43, 2  ;;  %v63_v48 = vadd.f32 %v62_v44, %v61_v42 }
  0x2e   :  { %v38_v49 = vadd.f32 %v37_v47, %v36_v43  ;;  %v64_v50 = vrot.slane %v63_v48, 2 }
  0x30   :  { %v39_v52 = vrot.slane %v38_v49, 1  ;;  %v65_v53 = vadd.f32 %v64_v50, %v63_v48 }
  0x32   :  { %v40_v54 = vadd.f32 %v39_v52, %v38_v49  ;;  %v66_v55 = vrot.slane %v65_v53, 1 }
  0x34   :  { %149 = vlog2.f32 %v40_v54  ;;  %v67_v57 = vadd.f32 %v66_v55, %v65_v53 }
  0x36   :  { %151 = vlog2.f32 %v67_v57 }
  0x41   :  { %v150_v61 = vpop.eup %149 }
  0x42   :  { %v42_v63 = vmul.f32 0.6931472, %v150_v61 }
  0x43   :  { %v152_v1 = vpop.eup %151 }
  0x44   :  { %v43_v2 = vadd.f32 %v42_v63, %v25_v20  ;;  %v69_v3 = vmul.f32 0.6931472, %v152_v1 }
  0x46   :  { %v70_v5 = vadd.f32 %v69_v3, %v52_v21 }
  0x48   :  { %v71_v7 = vadd.f32 %v70_v5, %v43_v2 }
  0x4a   :  { %v83_v8 = vsub.f32 %v71_v7, %v82_v6 }
  0x4c   :  { %v111_v9 = vsel %vm110_vm1, %v83_v8, 0.0 }
  0x4d   :  { %v113_v10 = vsel %vm112_vm2, %v111_v9, 0.0 }
  0x4e   :  { %114 = vadd.xlane.f32.xlu0 %v113_v10 }
  0xd7   :  { %v115_v11 = vpop.xlane.xlu0 %114 }
  0xd8   :  { %v116_v12 = vrot.slane %v115_v11, 4 }
  0xda   :  { %v117_v13 = vadd.f32 %v116_v12, %v115_v11 }
  0xdc   :  { %v118_v14 = vrot.slane %v117_v13, 2 }
  0xde   :  { %v119_v15 = vadd.f32 %v118_v14, %v117_v13 }
  0xe0   :  { %v120_v16 = vrot.slane %v119_v15, 1 }
  0xe2   :  { %v121_v17 = vadd.f32 %v120_v16, %v119_v15 }
  0xe4   :  { %138 = vpush %v121_v17 }
 0x115   :  { %s139_s0 = spop %138 }
 0x116   :  { %124 = sst [smem:[#allocation2]] %s139_s0 }
 0x117   :  { %132 = dma.smem_to_hbm %s163_s1, 16, %s206_s2, [#allocation3]  }
 0x118   :  { %161 = dma.done.wait [#allocation3], 16  }
 0x119   :  { %162 = vsyncadd [#allocation3], 4294967280 }
 0x11a   :  { %136 = sfence }
 0x11b   :  { %137 = vsyncpa [#allocation3], 1 }

</bundles_post_ra>
